<compile_context>
chip_gen: v7x
topology: tpu7x:2x2x1
jax: 0.10.0
libtpu: 0.0.40
codegen_flags: <defaults>
</compile_context>

<pallas_src>
import jax
import jax.numpy as jnp
import numpy as np
from jax.experimental import pallas as pl
from jax.experimental.pallas import tpu as pltpu

EPS = 1e-5


def basic_block_kernel(x_ref, w1_ref, w2_ref, g1_ref, b1_ref, g2_ref, b2_ref,
                       fold_ref, spread_ref, o_ref, pad_ref):
    # x_ref   : (H, N*W*C)         lane-dense f32 input slab (128 lanes)
    # w*_ref  : (3*N*W*C, N*W*C)   bf16 banded im2col weights (W-padding baked in)
    # g*/b*   : (1, C)             f32 BatchNorm affine parameters
    # fold    : (N*W*C, C)         0/1 per-channel reduce matrix
    # spread  : (C, N*W*C)         0/1 per-channel broadcast matrix
    # o_ref   : (H, N*W*C)         lane-dense f32 output slab
    # pad_ref : (H+2, N*W*C)       f32 scratch with 1-row top/bottom zero halo
    H, NWC = x_ref.shape
    C = g1_ref.shape[1]
    cnt = float((NWC // C) * H)                      # N*W*H elements per channel

    # Zero the halo scratch once (tiny); interior rows are overwritten below,
    # the top/bottom halo rows stay zero for both convolutions.
    pad_ref[...] = jnp.zeros_like(pad_ref)

    fold = fold_ref[...]
    spread = spread_ref[...]

    def conv3x3(w_ref):
        # One MXU push per row shift, accumulated in f32; K = N*W*C = 128 lanes,
        # bf16 operands, weight row slices are sublane-aligned (0/128/256).
        acc = jnp.zeros((H, NWC), jnp.float32)
        for dh in range(3):
            acc = acc + jnp.dot(
                pad_ref[dh:dh + H, :].astype(jnp.bfloat16),
                w_ref[dh * NWC:(dh + 1) * NWC, :],
                preferred_element_type=jnp.float32)
        return acc

    def batchnorm(y, g_ref, b_ref):
        # PyTorch train-mode BN: batch mean, biased batch variance,
        # var = E[y^2] - mean^2 so the centered slab is never materialized.
        sum_y = jnp.sum(y, axis=0, keepdims=True)                    # (1, NWC)
        sum_y2 = jnp.sum(y * y, axis=0, keepdims=True)               # (1, NWC)
        mean = jnp.dot(sum_y, fold, preferred_element_type=jnp.float32) / cnt
        ex2 = jnp.dot(sum_y2, fold, preferred_element_type=jnp.float32) / cnt
        var = ex2 - mean * mean                                      # (1, C)
        scale = g_ref[...] * jax.lax.rsqrt(var + EPS)                # (1, C)
        shift = b_ref[...] - mean * scale                            # (1, C)
        return (y * jnp.dot(scale, spread, preferred_element_type=jnp.float32)
                + jnp.dot(shift, spread, preferred_element_type=jnp.float32))

    # conv1 -> bn1 -> relu
    pad_ref[1:H + 1, :] = x_ref[...]
    out1 = jnp.maximum(batchnorm(conv3x3(w1_ref), g1_ref, b1_ref), 0.0)

    # conv2 -> bn2 (halo rows of pad_ref are still zero; only rewrite interior)
    pad_ref[1:H + 1, :] = out1
    out2 = batchnorm(conv3x3(w2_ref), g2_ref, b2_ref)

    # identity residual + relu (x_ref re-read at point of use)
    o_ref[...] = jnp.maximum(out2 + x_ref[...], 0.0)


def band_conv_weight(w_hwio, img_w, n_images):
    """Banded im2col matrix for a 3x3 / stride-1 / pad-1 conv with the W
    (left/right) zero-padding baked in (out-of-range taps dropped).

    B[dh][n*W*Cin + wi*Cin + ci, n*W*Cout + wo*Cout + co] = w[dh, wi-wo+1, ci, co]
    for |wi - wo| <= 1, block-diagonal over the image index n.
    Returned stacked over dh as (3*N*W*Cin, N*W*Cout), bf16.
    """
    w = np.asarray(w_hwio, np.float32)                   # (3, 3, Cin, Cout) HWIO
    cin, cout = w.shape[2], w.shape[3]
    band = np.zeros((3, n_images, img_w, cin, n_images, img_w, cout), np.float32)
    for dh in range(3):
        for wo in range(img_w):
            for dw in range(3):
                wi = wo + dw - 1
                if 0 <= wi < img_w:
                    for n in range(n_images):
                        band[dh, n, wi, :, n, wo, :] = w[dh, dw]
    band = band.reshape(3 * n_images * img_w * cin, n_images * img_w * cout)
    return jnp.asarray(band).astype(jnp.bfloat16)


def basic_block(x_nchw, w1, w2, g1, b1, g2, b2):
    """Wrapper: NCHW in / NCHW out, conv weights in HWIO (3,3,C,C), BN params (1,C)."""
    nb, ch, hh, ww = x_nchw.shape
    nwc = nb * ww * ch
    # Lane-dense slab: rows = H, lanes = N*W*C (= 128 for the test shape).
    x_slab = (jnp.transpose(x_nchw, (2, 0, 3, 1))
              .astype(jnp.float32)
              .reshape(hh, nwc))
    w1b = band_conv_weight(w1, img_w=ww, n_images=nb)
    w2b = band_conv_weight(w2, img_w=ww, n_images=nb)

    # Per-channel fold / spread 0/1 matrices (precomputed on host).
    lane = np.arange(nwc)
    fold_np = (lane[:, None] % ch == np.arange(ch)[None, :]).astype(np.float32)
    fold = jnp.asarray(fold_np)                      # (NWC, C)
    spread = jnp.asarray(fold_np.T.copy())           # (C, NWC)

    vmem = pl.BlockSpec(memory_space=pltpu.MemorySpace.VMEM)
    out_slab = pl.pallas_call(
        basic_block_kernel,
        out_shape=jax.ShapeDtypeStruct((hh, nwc), jnp.float32),
        in_specs=[vmem] * 9,
        out_specs=vmem,
        scratch_shapes=[pltpu.VMEM((hh + 2, nwc), jnp.float32)],
    )(x_slab, w1b, w2b, g1, b1, g2, b2, fold, spread)

    out = out_slab.reshape(hh, nb, ww, ch)
    return jnp.transpose(out, (1, 3, 0, 2))          # -> NCHW


def reference(x_nchw, w1, w2, g1, b1, g2, b2):
    """Pure-JAX f32 reference of the same forward pass (for a sanity check)."""
    x = jnp.transpose(x_nchw, (0, 2, 3, 1)).astype(jnp.float32)

    def conv(y, w):
        return jax.lax.conv_general_dilated(
            y, w, (1, 1), "SAME",
            dimension_numbers=("NHWC", "HWIO", "NHWC"))

    def bn(y, g, b):
        mean = jnp.mean(y, axis=(0, 1, 2), keepdims=True)
        var = jnp.mean((y - mean) ** 2, axis=(0, 1, 2), keepdims=True)
        return ((y - mean) * jax.lax.rsqrt(var + EPS)
                * g.reshape(1, 1, 1, -1) + b.reshape(1, 1, 1, -1))

    out = jax.nn.relu(bn(conv(x, w1), g1, b1))
    out = bn(conv(out, w2), g2, b2)
    out = jax.nn.relu(out + x)
    return jnp.transpose(out, (0, 3, 1, 2))


if __name__ == "__main__":
    # BasicBlock(inplanes=4, planes=4, stride=1, downsample=None)
    N, C, H, W = 2, 4, 16, 16

    key = jax.random.PRNGKey(0)
    kx, kw1, kw2, kg1, kb1, kg2, kb2 = jax.random.split(key, 7)

    x = jax.random.normal(kx, (N, C, H, W), jnp.float32)           # NCHW input
    w1 = 0.3 * jax.random.normal(kw1, (3, 3, C, C), jnp.float32)   # HWIO
    w2 = 0.3 * jax.random.normal(kw2, (3, 3, C, C), jnp.float32)   # HWIO
    g1 = 1.0 + 0.1 * jax.random.normal(kg1, (1, C), jnp.float32)
    b1 = 0.1 * jax.random.normal(kb1, (1, C), jnp.float32)
    g2 = 1.0 + 0.1 * jax.random.normal(kg2, (1, C), jnp.float32)
    b2 = 0.1 * jax.random.normal(kb2, (1, C), jnp.float32)

    out = basic_block(x, w1, w2, g1, b1, g2, b2)
    jax.block_until_ready(out)

    # Tolerance loosened for the bf16 MXU operands (accumulation stays f32).
    ref = reference(x, w1, w2, g1, b1, g2, b2)
    np.testing.assert_allclose(np.asarray(out), np.asarray(ref),
                               rtol=2e-2, atol=2e-2)

    print("KERNEL_OK")
</pallas_src>

<mosaic_0001>
module attributes {stable_mosaic.version = 11 : i64} {
  func.func @basic_block_kernel(%arg0: memref<16x128xf32, #tpu.memory_space<vmem>>, %arg1: memref<384x128xbf16, #tpu.memory_space<vmem>>, %arg2: memref<384x128xbf16, #tpu.memory_space<vmem>>, %arg3: memref<1x4xf32, #tpu.memory_space<vmem>>, %arg4: memref<1x4xf32, #tpu.memory_space<vmem>>, %arg5: memref<1x4xf32, #tpu.memory_space<vmem>>, %arg6: memref<1x4xf32, #tpu.memory_space<vmem>>, %arg7: memref<128x4xf32, #tpu.memory_space<vmem>>, %arg8: memref<4x128xf32, #tpu.memory_space<vmem>>, %arg9: memref<16x128xf32, #tpu.memory_space<vmem>>, %arg10: memref<18x128xf32, #tpu.memory_space<vmem>>) attributes {dimension_semantics = [], scalar_prefetch = 0 : i64, scratch_operands = 1 : i64, tpu.core_type = #tpu.core_type<tc>} {
    %cst = arith.constant 0.000000e+00 : f32
    %0 = vector.broadcast %cst : f32 to vector<18x128xf32>
    %c0 = arith.constant 0 : index
    %c0_0 = arith.constant 0 : index
    %1 = vector.load %arg10[%c0, %c0_0] : memref<18x128xf32, #tpu.memory_space<vmem>>, vector<18x128xf32>
    tpu.vector_store %arg10[%c0, %c0_0], %0 {strides = array<i32>} : memref<18x128xf32, #tpu.memory_space<vmem>>, vector<18x128xf32>,
    %c0_1 = arith.constant 0 : index
    %c0_2 = arith.constant 0 : index
    %2 = vector.load %arg7[%c0_1, %c0_2] : memref<128x4xf32, #tpu.memory_space<vmem>>, vector<128x4xf32>
    %c0_3 = arith.constant 0 : index
    %c0_4 = arith.constant 0 : index
    %3 = vector.load %arg8[%c0_3, %c0_4] : memref<4x128xf32, #tpu.memory_space<vmem>>, vector<4x128xf32>
    %c0_5 = arith.constant 0 : index
    %c0_6 = arith.constant 0 : index
    %4 = vector.load %arg0[%c0_5, %c0_6] : memref<16x128xf32, #tpu.memory_space<vmem>>, vector<16x128xf32>
    %c1 = arith.constant 1 : index
    %c0_7 = arith.constant 0 : index
    %5 = vector.load %arg10[%c1, %c0_7] : memref<18x128xf32, #tpu.memory_space<vmem>>, vector<16x128xf32>
    tpu.vector_store %arg10[%c1, %c0_7], %4 {strides = array<i32>} : memref<18x128xf32, #tpu.memory_space<vmem>>, vector<16x128xf32>,
    %cst_8 = arith.constant 0.000000e+00 : f32
    %6 = vector.broadcast %cst_8 : f32 to vector<16x128xf32>
    %c0_9 = arith.constant 0 : index
    %c0_10 = arith.constant 0 : index
    %7 = vector.load %arg10[%c0_9, %c0_10] : memref<18x128xf32, #tpu.memory_space<vmem>>, vector<16x128xf32>
    %8 = arith.truncf %7 : vector<16x128xf32> to vector<16x128xbf16>
    %c0_11 = arith.constant 0 : index
    %c0_12 = arith.constant 0 : index
    %9 = vector.load %arg1[%c0_11, %c0_12] : memref<384x128xbf16, #tpu.memory_space<vmem>>, vector<128x128xbf16>
    %cst_13 = arith.constant dense<0.000000e+00> : vector<16x128xf32>
    %10 = tpu.matmul %8, %9, %cst_13 {dimension_numbers = #tpu.dot_dimension_numbers<[1], [0], [0], [1], [0, 0, 1, 1], [], []>} : vector<16x128xbf16>, vector<128x128xbf16>, vector<16x128xf32> -> vector<16x128xf32>
    %11 = arith.addf %6, %10 : vector<16x128xf32>
    %c1_14 = arith.constant 1 : index
    %c0_15 = arith.constant 0 : index
    %12 = vector.load %arg10[%c1_14, %c0_15] : memref<18x128xf32, #tpu.memory_space<vmem>>, vector<16x128xf32>
    %13 = arith.truncf %12 : vector<16x128xf32> to vector<16x128xbf16>
    %c128 = arith.constant 128 : index
    %c0_16 = arith.constant 0 : index
    %14 = vector.load %arg1[%c128, %c0_16] : memref<384x128xbf16, #tpu.memory_space<vmem>>, vector<128x128xbf16>
    %cst_17 = arith.constant dense<0.000000e+00> : vector<16x128xf32>
    %15 = tpu.matmul %13, %14, %cst_17 {dimension_numbers = #tpu.dot_dimension_numbers<[1], [0], [0], [1], [0, 0, 1, 1], [], []>} : vector<16x128xbf16>, vector<128x128xbf16>, vector<16x128xf32> -> vector<16x128xf32>
    %16 = arith.addf %11, %15 : vector<16x128xf32>
    %c2 = arith.constant 2 : index
    %c0_18 = arith.constant 0 : index
    %17 = vector.load %arg10[%c2, %c0_18] : memref<18x128xf32, #tpu.memory_space<vmem>>, vector<16x128xf32>
    %18 = arith.truncf %17 : vector<16x128xf32> to vector<16x128xbf16>
    %c256 = arith.constant 256 : index
    %c0_19 = arith.constant 0 : index
    %19 = vector.load %arg1[%c256, %c0_19] : memref<384x128xbf16, #tpu.memory_space<vmem>>, vector<128x128xbf16>
    %cst_20 = arith.constant dense<0.000000e+00> : vector<16x128xf32>
    %20 = tpu.matmul %18, %19, %cst_20 {dimension_numbers = #tpu.dot_dimension_numbers<[1], [0], [0], [1], [0, 0, 1, 1], [], []>} : vector<16x128xbf16>, vector<128x128xbf16>, vector<16x128xf32> -> vector<16x128xf32>
    %21 = arith.addf %16, %20 : vector<16x128xf32>
    %cst_21 = arith.constant dense<0.000000e+00> : vector<128xf32>
    %22 = vector.multi_reduction <add>, %21, %cst_21 [0] : vector<16x128xf32> to vector<128xf32>
    %23 = vector.shape_cast %22 : vector<128xf32> to vector<1x128xf32>
    %24 = arith.mulf %21, %21 : vector<16x128xf32>
    %cst_22 = arith.constant dense<0.000000e+00> : vector<128xf32>
    %25 = vector.multi_reduction <add>, %24, %cst_22 [0] : vector<16x128xf32> to vector<128xf32>
    %26 = vector.shape_cast %25 : vector<128xf32> to vector<1x128xf32>
    %cst_23 = arith.constant dense<0.000000e+00> : vector<1x4xf32>
    %27 = tpu.matmul %23, %2, %cst_23 {dimension_numbers = #tpu.dot_dimension_numbers<[1], [0], [0], [1], [0, 0, 1, 1], [], []>} : vector<1x128xf32>, vector<128x4xf32>, vector<1x4xf32> -> vector<1x4xf32>
    %cst_24 = arith.constant 5.120000e+02 : f32
    %28 = vector.broadcast %cst_24 : f32 to vector<1x4xf32>
    %29 = arith.divf %27, %28 : vector<1x4xf32>
    %cst_25 = arith.constant dense<0.000000e+00> : vector<1x4xf32>
    %30 = tpu.matmul %26, %2, %cst_25 {dimension_numbers = #tpu.dot_dimension_numbers<[1], [0], [0], [1], [0, 0, 1, 1], [], []>} : vector<1x128xf32>, vector<128x4xf32>, vector<1x4xf32> -> vector<1x4xf32>
    %cst_26 = arith.constant 5.120000e+02 : f32
    %31 = vector.broadcast %cst_26 : f32 to vector<1x4xf32>
    %32 = arith.divf %30, %31 : vector<1x4xf32>
    %33 = arith.mulf %29, %29 : vector<1x4xf32>
    %34 = arith.subf %32, %33 : vector<1x4xf32>
    %c0_27 = arith.constant 0 : index
    %c0_28 = arith.constant 0 : index
    %35 = vector.load %arg3[%c0_27, %c0_28] : memref<1x4xf32, #tpu.memory_space<vmem>>, vector<1x4xf32>
    %cst_29 = arith.constant 9.99999974E-6 : f32
    %36 = vector.broadcast %cst_29 : f32 to vector<1x4xf32>
    %37 = arith.addf %34, %36 : vector<1x4xf32>
    %38 = math.rsqrt %37 : vector<1x4xf32>
    %39 = arith.mulf %35, %38 : vector<1x4xf32>
    %c0_30 = arith.constant 0 : index
    %c0_31 = arith.constant 0 : index
    %40 = vector.load %arg4[%c0_30, %c0_31] : memref<1x4xf32, #tpu.memory_space<vmem>>, vector<1x4xf32>
    %41 = arith.mulf %29, %39 : vector<1x4xf32>
    %42 = arith.subf %40, %41 : vector<1x4xf32>
    %cst_32 = arith.constant dense<0.000000e+00> : vector<1x128xf32>
    %43 = tpu.matmul %39, %3, %cst_32 {dimension_numbers = #tpu.dot_dimension_numbers<[1], [0], [0], [1], [0, 0, 1, 1], [], []>} : vector<1x4xf32>, vector<4x128xf32>, vector<1x128xf32> -> vector<1x128xf32>
    %44 = vector.broadcast %43 : vector<1x128xf32> to vector<16x128xf32>
    %45 = arith.mulf %21, %44 : vector<16x128xf32>
    %cst_33 = arith.constant dense<0.000000e+00> : vector<1x128xf32>
    %46 = tpu.matmul %42, %3, %cst_33 {dimension_numbers = #tpu.dot_dimension_numbers<[1], [0], [0], [1], [0, 0, 1, 1], [], []>} : vector<1x4xf32>, vector<4x128xf32>, vector<1x128xf32> -> vector<1x128xf32>
    %47 = vector.broadcast %46 : vector<1x128xf32> to vector<16x128xf32>
    %48 = arith.addf %45, %47 : vector<16x128xf32>
    %cst_34 = arith.constant 0.000000e+00 : f32
    %49 = vector.broadcast %cst_34 : f32 to vector<16x128xf32>
    %50 = arith.maximumf %48, %49 : vector<16x128xf32>
    %c1_35 = arith.constant 1 : index
    %c0_36 = arith.constant 0 : index
    %51 = vector.load %arg10[%c1_35, %c0_36] : memref<18x128xf32, #tpu.memory_space<vmem>>, vector<16x128xf32>
    tpu.vector_store %arg10[%c1_35, %c0_36], %50 {strides = array<i32>} : memref<18x128xf32, #tpu.memory_space<vmem>>, vector<16x128xf32>,
    %cst_37 = arith.constant 0.000000e+00 : f32
    %52 = vector.broadcast %cst_37 : f32 to vector<16x128xf32>
    %c0_38 = arith.constant 0 : index
    %c0_39 = arith.constant 0 : index
    %53 = vector.load %arg10[%c0_38, %c0_39] : memref<18x128xf32, #tpu.memory_space<vmem>>, vector<16x128xf32>
    %54 = arith.truncf %53 : vector<16x128xf32> to vector<16x128xbf16>
    %c0_40 = arith.constant 0 : index
    %c0_41 = arith.constant 0 : index
    %55 = vector.load %arg2[%c0_40, %c0_41] : memref<384x128xbf16, #tpu.memory_space<vmem>>, vector<128x128xbf16>
    %cst_42 = arith.constant dense<0.000000e+00> : vector<16x128xf32>
    %56 = tpu.matmul %54, %55, %cst_42 {dimension_numbers = #tpu.dot_dimension_numbers<[1], [0], [0], [1], [0, 0, 1, 1], [], []>} : vector<16x128xbf16>, vector<128x128xbf16>, vector<16x128xf32> -> vector<16x128xf32>
    %57 = arith.addf %52, %56 : vector<16x128xf32>
    %c1_43 = arith.constant 1 : index
    %c0_44 = arith.constant 0 : index
    %58 = vector.load %arg10[%c1_43, %c0_44] : memref<18x128xf32, #tpu.memory_space<vmem>>, vector<16x128xf32>
    %59 = arith.truncf %58 : vector<16x128xf32> to vector<16x128xbf16>
    %c128_45 = arith.constant 128 : index
    %c0_46 = arith.constant 0 : index
    %60 = vector.load %arg2[%c128_45, %c0_46] : memref<384x128xbf16, #tpu.memory_space<vmem>>, vector<128x128xbf16>
    %cst_47 = arith.constant dense<0.000000e+00> : vector<16x128xf32>
    %61 = tpu.matmul %59, %60, %cst_47 {dimension_numbers = #tpu.dot_dimension_numbers<[1], [0], [0], [1], [0, 0, 1, 1], [], []>} : vector<16x128xbf16>, vector<128x128xbf16>, vector<16x128xf32> -> vector<16x128xf32>
    %62 = arith.addf %57, %61 : vector<16x128xf32>
    %c2_48 = arith.constant 2 : index
    %c0_49 = arith.constant 0 : index
    %63 = vector.load %arg10[%c2_48, %c0_49] : memref<18x128xf32, #tpu.memory_space<vmem>>, vector<16x128xf32>
    %64 = arith.truncf %63 : vector<16x128xf32> to vector<16x128xbf16>
    %c256_50 = arith.constant 256 : index
    %c0_51 = arith.constant 0 : index
    %65 = vector.load %arg2[%c256_50, %c0_51] : memref<384x128xbf16, #tpu.memory_space<vmem>>, vector<128x128xbf16>
    %cst_52 = arith.constant dense<0.000000e+00> : vector<16x128xf32>
    %66 = tpu.matmul %64, %65, %cst_52 {dimension_numbers = #tpu.dot_dimension_numbers<[1], [0], [0], [1], [0, 0, 1, 1], [], []>} : vector<16x128xbf16>, vector<128x128xbf16>, vector<16x128xf32> -> vector<16x128xf32>
    %67 = arith.addf %62, %66 : vector<16x128xf32>
    %cst_53 = arith.constant dense<0.000000e+00> : vector<128xf32>
    %68 = vector.multi_reduction <add>, %67, %cst_53 [0] : vector<16x128xf32> to vector<128xf32>
    %69 = vector.shape_cast %68 : vector<128xf32> to vector<1x128xf32>
    %70 = arith.mulf %67, %67 : vector<16x128xf32>
    %cst_54 = arith.constant dense<0.000000e+00> : vector<128xf32>
    %71 = vector.multi_reduction <add>, %70, %cst_54 [0] : vector<16x128xf32> to vector<128xf32>
    %72 = vector.shape_cast %71 : vector<128xf32> to vector<1x128xf32>
    %cst_55 = arith.constant dense<0.000000e+00> : vector<1x4xf32>
    %73 = tpu.matmul %69, %2, %cst_55 {dimension_numbers = #tpu.dot_dimension_numbers<[1], [0], [0], [1], [0, 0, 1, 1], [], []>} : vector<1x128xf32>, vector<128x4xf32>, vector<1x4xf32> -> vector<1x4xf32>
    %cst_56 = arith.constant 5.120000e+02 : f32
    %74 = vector.broadcast %cst_56 : f32 to vector<1x4xf32>
    %75 = arith.divf %73, %74 : vector<1x4xf32>
    %cst_57 = arith.constant dense<0.000000e+00> : vector<1x4xf32>
    %76 = tpu.matmul %72, %2, %cst_57 {dimension_numbers = #tpu.dot_dimension_numbers<[1], [0], [0], [1], [0, 0, 1, 1], [], []>} : vector<1x128xf32>, vector<128x4xf32>, vector<1x4xf32> -> vector<1x4xf32>
    %cst_58 = arith.constant 5.120000e+02 : f32
    %77 = vector.broadcast %cst_58 : f32 to vector<1x4xf32>
    %78 = arith.divf %76, %77 : vector<1x4xf32>
    %79 = arith.mulf %75, %75 : vector<1x4xf32>
    %80 = arith.subf %78, %79 : vector<1x4xf32>
    %c0_59 = arith.constant 0 : index
    %c0_60 = arith.constant 0 : index
    %81 = vector.load %arg5[%c0_59, %c0_60] : memref<1x4xf32, #tpu.memory_space<vmem>>, vector<1x4xf32>
    %cst_61 = arith.constant 9.99999974E-6 : f32
    %82 = vector.broadcast %cst_61 : f32 to vector<1x4xf32>
    %83 = arith.addf %80, %82 : vector<1x4xf32>
    %84 = math.rsqrt %83 : vector<1x4xf32>
    %85 = arith.mulf %81, %84 : vector<1x4xf32>
    %c0_62 = arith.constant 0 : index
    %c0_63 = arith.constant 0 : index
    %86 = vector.load %arg6[%c0_62, %c0_63] : memref<1x4xf32, #tpu.memory_space<vmem>>, vector<1x4xf32>
    %87 = arith.mulf %75, %85 : vector<1x4xf32>
    %88 = arith.subf %86, %87 : vector<1x4xf32>
    %cst_64 = arith.constant dense<0.000000e+00> : vector<1x128xf32>
    %89 = tpu.matmul %85, %3, %cst_64 {dimension_numbers = #tpu.dot_dimension_numbers<[1], [0], [0], [1], [0, 0, 1, 1], [], []>} : vector<1x4xf32>, vector<4x128xf32>, vector<1x128xf32> -> vector<1x128xf32>
    %90 = vector.broadcast %89 : vector<1x128xf32> to vector<16x128xf32>
    %91 = arith.mulf %67, %90 : vector<16x128xf32>
    %cst_65 = arith.constant dense<0.000000e+00> : vector<1x128xf32>
    %92 = tpu.matmul %88, %3, %cst_65 {dimension_numbers = #tpu.dot_dimension_numbers<[1], [0], [0], [1], [0, 0, 1, 1], [], []>} : vector<1x4xf32>, vector<4x128xf32>, vector<1x128xf32> -> vector<1x128xf32>
    %93 = vector.broadcast %92 : vector<1x128xf32> to vector<16x128xf32>
    %94 = arith.addf %91, %93 : vector<16x128xf32>
    %c0_66 = arith.constant 0 : index
    %c0_67 = arith.constant 0 : index
    %95 = vector.load %arg0[%c0_66, %c0_67] : memref<16x128xf32, #tpu.memory_space<vmem>>, vector<16x128xf32>
    %96 = arith.addf %94, %95 : vector<16x128xf32>
    %cst_68 = arith.constant 0.000000e+00 : f32
    %97 = vector.broadcast %cst_68 : f32 to vector<16x128xf32>
    %98 = arith.maximumf %96, %97 : vector<16x128xf32>
    %c0_69 = arith.constant 0 : index
    %c0_70 = arith.constant 0 : index
    %99 = vector.load %arg9[%c0_69, %c0_70] : memref<16x128xf32, #tpu.memory_space<vmem>>, vector<16x128xf32>
    tpu.vector_store %arg9[%c0_69, %c0_70], %98 {strides = array<i32>} : memref<16x128xf32, #tpu.memory_space<vmem>>, vector<16x128xf32>,
    return
  }
}

</mosaic_0001>

<bundles_post_ra>
// kernel: tpu_custom_call.1
= control target key start
LH: loop header
LB: loop body
LE: loop exit
PB: predicated region body
PF: predicated region fallthrough
CT: control target
= control target key end

     0   :  { %14 = vsyncpa [#allocation4], 0  ;;  %s2518_s0 = inlined_call_operand.vmem [shape: f32[16,128], index: 0, kind: input, shape index: {}]   ;;  %s2519_s1 = inlined_call_operand.hbm [shape: bf16[384,128], index: 1, kind: input, shape index: {}]   ;;  %s2520_s2 = inlined_call_operand.hbm [shape: bf16[384,128], index: 2, kind: input, shape index: {}]   ;;  %s2521_s3 = inlined_call_operand.vmem [shape: f32[1,4], index: 3, kind: input, shape index: {}]   ;;  %s2522_s4 = inlined_call_operand.vmem [shape: f32[1,4], index: 4, kind: input, shape index: {}]   ;;  %s2523_s5 = inlined_call_operand.vmem [shape: f32[1,4], index: 5, kind: input, shape index: {}]   ;;  %s2524_s6 = inlined_call_operand.vmem [shape: f32[1,4], index: 6, kind: input, shape index: {}]   ;;  %s2525_s7 = inlined_call_operand.vmem [shape: f32[128,4], index: 7, kind: input, shape index: {}]   ;;  %s2526_s8 = inlined_call_operand.vmem [shape: f32[4,128], index: 8, kind: input, shape index: {}]   ;;  %s2527_s9 = inlined_call_operand.hbm [shape: f32[16,128], index: 9, kind: output, shape index: {}]  }
   0x1   :  { %15 = vsyncpa [#allocation7], 0 }
   0x2   :  { %16 = vsyncpa [#allocation5], 0  ;;  %s2136_s30 = smov [#allocation3]   ;;  %s2064_s13 = scalar_lea.hbm %s2519_s1, 3072 }
   0x3   :  { %s24_s10 = sshll.u32 %s2136_s30, 4  ;;  %p2065_p0 = scmp.ne.s32.totalorder %s2519_s1, %s2064_s13  ;;  %s25_s10 = int_to_ptr.vmem [resolvable:$true] %s24_s10 }
   0x4   :  { %p2068_p1 = scmp.lt.u32.totalorder %s2064_s13, %s2519_s1 }
   0x6   :  { %p2070_p2 = pnand %p2068_p1, %p2065_p0 }
   0x8   :  { %2073 = shalt.err (!%p2070_p2)
}
   0x9   :  { %s2074_s18 = scalar_lea.vmem %s25_s10, 3072  ;;  %p2079_p4 = scmp.lt.s32.totalorder %s25_s10, %s25_s10 }
   0xa   :  { %p2075_p3 = scmp.ne.s32.totalorder %s25_s10, %s2074_s18  ;;  %p2080_p5 = scmp.lt.s32.totalorder %s2074_s18, %s2074_s18 }
   0xc   :  { %p2081_p6 = por %p2080_p5, %p2079_p4 }
   0xe   :  { %p2082_p7 = pnand %p2081_p6, %p2075_p3 }
  0x10   :  { %2085 = shalt.err (!%p2082_p7)
}
  0x11   :  { %s2137_s19 = smov 64   ;;  %s2138_s20 = smov 4  }
  0x12   :  { %30 = dma.hbm_to_vmem [thread:$0]  %s2519_s1, 3072, %s25_s10, [#allocation4], %s2137_s19, %s2137_s19, %s2138_s20  }
  0x13   :  { %s2139_s23 = smov [#allocation6]   ;;  %s2086_s27 = scalar_lea.hbm %s2520_s2, 3072 }
  0x14   :  { %s36_s24 = sshll.u32 %s2139_s23, 4  ;;  %p2087_p8 = scmp.ne.s32.totalorder %s2520_s2, %s2086_s27  ;;  %s37_s24 = int_to_ptr.vmem [resolvable:$true] %s36_s24 }
  0x15   :  { %p2090_p9 = scmp.lt.u32.totalorder %s2086_s27, %s2520_s2 }
  0x17   :  { %p2092_p10 = pnand %p2090_p9, %p2087_p8 }
  0x19   :  { %2095 = shalt.err (!%p2092_p10)
}
  0x1a   :  { %s2096_s12 = scalar_lea.vmem %s37_s24, 3072  ;;  %p2101_p12 = scmp.lt.s32.totalorder %s37_s24, %s37_s24 }
  0x1b   :  { %p2097_p11 = scmp.ne.s32.totalorder %s37_s24, %s2096_s12  ;;  %p2102_p13 = scmp.lt.s32.totalorder %s2096_s12, %s2096_s12 }
  0x1d   :  { %p2103_p0 = por %p2102_p13, %p2101_p12 }
  0x1f   :  { %p2104_p1 = pnand %p2103_p0, %p2097_p11 }
  0x21   :  { %2107 = shalt.err (!%p2104_p1)
}
  0x22   :  { %42 = dma.hbm_to_vmem [thread:$0]  %s2520_s2, 3072, %s37_s24, [#allocation7], %s2137_s19, %s2137_s19, %s2138_s20  }
  0x23   :  { %2130 = dma.done.wait [#allocation4], 3072  }
  0x24   :  { %2131 = vsyncadd [#allocation4], 4294964224 }
  0x25   :  { %2132 = dma.done.wait [#allocation7], 3072  }
  0x26   :  { %2133 = vsyncadd [#allocation7], 4294964224  ;;  %v2140_v0 = vmov 0.0   ;;  %vm2141_vm0 = vmmov 0   ;;  %v2142_v1 = vmov 0.0|0.0   ;;  %v2012_v2 = vld [vmem:[#allocation3 + $0x40] sm:$0xff]  }
  0x27   :  { %1610 = vmatprep.subr.bf16.mxu0 %v2140_v0  ;;  %62 = vst [vmem:[#allocation2] sm:$0xff] %v2140_v0  ;;  %63 = vst [vmem:[#allocation2 + $0x8] sm:$0xff] %v2140_v0  ;;  %1626 = vmatprep.mubr.msk.bf16.mxu0 %vm2141_vm0, %v2140_v0  ;;  %v2013_v3 = vld [vmem:[#allocation3 + $0x48] sm:$0xff]   ;;  %v2014_v4 = vld [vmem:[#allocation3 + $0x50] sm:$0xff]   ;;  %vm584_vm1 = vcmask 1043456   ;;  %vm580_vm2 = vcmask 31744  }
  0x28   :  { %64 = vst [vmem:[#allocation2 + $0x10] sm:$0x3] %v2140_v0  ;;  %1890 = vmatprep.subr.bf16.mxu1 %v2142_v1  ;;  %1702 = vmatprep.mubr.msk.f32.mxu1 %vm2141_vm0, %v2140_v0  ;;  %v2234_v5 = vld [vmem:[%s2518_s0] sm:$0xff]  ;;  %v2239_v6 = vld [vmem:[%s2518_s0 + $0x8] sm:$0xff]  ;;  %v2015_v7 = vld [vmem:[#allocation3 + $0x58] sm:$0xff]  }
  0x29   :  { %1611 = vmatpush3.bf16.msra.mxu0 %v2012_v2  ;;  %84 = vst [vmem:[#allocation2 + $0x1] sm:$0xff] %v2234_v5  ;;  %85 = vst [vmem:[#allocation2 + $0x9] sm:$0xff] %v2239_v6  ;;  %v2016_v8 = vld [vmem:[#allocation3 + $0x60] sm:$0xff]   ;;  %v2017_v9 = vld [vmem:[#allocation3 + $0x68] sm:$0xff]   ;;  %v107_v20 = vpack.c.bf16 %v2239_v6, %v2234_v5 }
  0x2a   :  { %1612 = vmatprep.subr.bf16.mxu0 %v2140_v0  ;;  %v2018_v10 = vld [vmem:[#allocation3 + $0x70] sm:$0xff]   ;;  %v2019_v11 = vld [vmem:[#allocation3 + $0x78] sm:$0xff]   ;;  %v65_v12 = vld [vmem:[%s2525_s7] sm:$0xff] }
  0x2b   :  { %v66_v13 = vld [vmem:[%s2525_s7 + $0x8] sm:$0xff]  ;;  %v67_v14 = vld [vmem:[%s2525_s7 + $0x10] sm:$0xff]  ;;  %v68_v16 = vld [vmem:[%s2525_s7 + $0x18] sm:$0xff] }
  0x2c   :  { %v2257_v15 = vpack.c.bf16 %v66_v13, %v65_v12  ;;  %v2020_v17 = vld [vmem:[#allocation3] sm:$0xff]   ;;  %v69_v18 = vld [vmem:[%s2525_s7 + $0x20] sm:$0xff]  ;;  %v70_v19 = vld [vmem:[%s2525_s7 + $0x28] sm:$0xff]  ;;  %v2271_v21 = vpack.c.bf16 %v68_v16, %v67_v14 }
  0x2d   :  { %1613 = vmatpush3.bf16.msra.mxu0 %v2013_v3  ;;  %v2021_v22 = vld [vmem:[#allocation3 + $0x8] sm:$0xff]   ;;  %v71_v23 = vld [vmem:[%s2525_s7 + $0x30] sm:$0xff]  ;;  %v72_v24 = vld [vmem:[%s2525_s7 + $0x38] sm:$0xff]  ;;  %v2282_v25 = vpack.c.bf16 %v70_v19, %v69_v18 }
  0x2e   :  { %1614 = vmatprep.subr.bf16.mxu0 %v2140_v0  ;;  %1892 = vmatpush3.bf16.msra.mxu1 %v2257_v15  ;;  %v2022_v26 = vld [vmem:[#allocation3 + $0x10] sm:$0xff]   ;;  %v2289_v27 = vpack.c.bf16 %v72_v24, %v71_v23  ;;  %v2023_v28 = vld [vmem:[#allocation3 + $0x18] sm:$0xff]   ;;  %v2024_v29 = vld [vmem:[#allocation3 + $0x20] sm:$0xff]  }
  0x2f   :  { %1893 = vmatprep.subr.bf16.mxu1 %v2142_v1  ;;  %v2025_v30 = vld [vmem:[#allocation3 + $0x28] sm:$0xff]   ;;  %v2026_v31 = vld [vmem:[#allocation3 + $0x30] sm:$0xff]   ;;  %v2027_v32 = vld [vmem:[#allocation3 + $0x38] sm:$0xff]  }
  0x30   :  { %v86_v33 = vld [vmem:[#allocation2] sm:$0xff]  ;;  %v87_v34 = vld [vmem:[#allocation2 + $0x8] sm:$0xff]  ;;  %v2028_v36 = vld [vmem:[#allocation3 + $0x80] sm:$0xff]  }
  0x31   :  { %1615 = vmatpush3.bf16.msra.mxu0 %v2014_v4  ;;  %v88_v35 = vpack.c.bf16 %v87_v34, %v86_v33  ;;  %v2029_v37 = vld [vmem:[#allocation3 + $0x88] sm:$0xff]   ;;  %v2030_v38 = vld [vmem:[#allocation3 + $0x90] sm:$0xff]   ;;  %v2031_v39 = vld [vmem:[#allocation3 + $0x98] sm:$0xff]  }
  0x32   :  { %1616 = vmatprep.subr.bf16.mxu0 %v2140_v0  ;;  %1895 = vmatpush3.bf16.msra.mxu1 %v2271_v21  ;;  %v2032_v40 = vld [vmem:[#allocation3 + $0xa0] sm:$0xff]   ;;  %v2033_v41 = vld [vmem:[#allocation3 + $0xa8] sm:$0xff]   ;;  %v2034_v42 = vld [vmem:[#allocation3 + $0xb0] sm:$0xff]  }
  0x33   :  { %1896 = vmatprep.subr.bf16.mxu1 %v2142_v1  ;;  %v2035_v43 = vld [vmem:[#allocation3 + $0xb8] sm:$0xff]   ;;  %v302_v44 = vld [vmem:[#allocation2 + $0x2] sm:$0xff]  ;;  %v76_v51 = vld [vmem:[%s2525_s7 + $0x58] sm:$0xff] }
  0x34   :  { %v303_v45 = vld [vmem:[#allocation2 + $0xa] sm:$0xff]  ;;  %v73_v47 = vld [vmem:[%s2525_s7 + $0x40] sm:$0xff]  ;;  %v80_v57 = vld [vmem:[%s2525_s7 + $0x78] sm:$0xff] }
  0x35   :  { %1617 = vmatpush3.bf16.msra.mxu0 %v2015_v7  ;;  %v304_v46 = vpack.c.bf16 %v303_v45, %v302_v44  ;;  %v74_v48 = vld [vmem:[%s2525_s7 + $0x48] sm:$0xff]  ;;  %v75_v50 = vld [vmem:[%s2525_s7 + $0x50] sm:$0xff]  ;;  %v77_v53 = vld [vmem:[%s2525_s7 + $0x60] sm:$0xff] }
  0x36   :  { %1618 = vmatprep.subr.bf16.mxu0 %v2140_v0  ;;  %1898 = vmatpush3.bf16.msra.mxu1 %v2282_v25  ;;  %v2327_v49 = vpack.c.bf16 %v74_v48, %v73_v47  ;;  %v2339_v52 = vpack.c.bf16 %v76_v51, %v75_v50  ;;  %v78_v54 = vld [vmem:[%s2525_s7 + $0x68] sm:$0xff]  ;;  %v79_v56 = vld [vmem:[%s2525_s7 + $0x70] sm:$0xff]  ;;  %v573_v33 = vld [vmem:[%s2521_s3] sm:$0x1]  ;;  %v658_v47 = vlaneseq }
  0x37   :  { %1899 = vmatprep.subr.bf16.mxu1 %v2142_v1  ;;  %v2351_v55 = vpack.c.bf16 %v78_v54, %v77_v53  ;;  %v2363_v58 = vpack.c.bf16 %v80_v57, %v79_v56  ;;  %v2041_v44 = vld [vmem:[#allocation6 + $0x68] sm:$0xff]   ;;  %v2042_v45 = vld [vmem:[#allocation6 + $0x70] sm:$0xff]  }
  0x38   :  { %v659_v48 = vshrl.u32 %v658_v47, 7 }
  0x39   :  { %1619 = vmatpush3.bf16.msra.mxu0 %v2016_v8 }
  0x3a   :  { %1620 = vmatprep.subr.bf16.mxu0 %v2140_v0  ;;  %1901 = vmatpush3.bf16.msra.mxu1 %v2289_v27  ;;  %v2430_v50 = vsub.s32 0, %v659_v48 }
  0x3b   :  { %1902 = vmatprep.subr.bf16.mxu1 %v2142_v1 }
  0x3d   :  { %1621 = vmatpush3.bf16.msra.mxu0 %v2017_v9 }
  0x3e   :  { %1622 = vmatprep.subr.bf16.mxu0 %v2140_v0  ;;  %1904 = vmatpush3.bf16.msra.mxu1 %v2327_v49 }
  0x3f   :  { %1905 = vmatprep.subr.bf16.mxu1 %v2142_v1 }
  0x41   :  { %1623 = vmatpush3.bf16.msra.mxu0 %v2018_v10 }
  0x42   :  { %1624 = vmatprep.subr.bf16.mxu0 %v2140_v0  ;;  %1907 = vmatpush3.bf16.msra.mxu1 %v2339_v52 }
  0x43   :  { %1908 = vmatprep.subr.bf16.mxu1 %v2142_v1 }
  0x45   :  { %1625 = vmatpush3.bf16.msra.mxu0 %v2019_v11 }
  0x46   :  { %1630 = vmatprep.subr.bf16.mxu0 %v2140_v0  ;;  %1910 = vmatpush3.bf16.msra.mxu1 %v2351_v55 }
  0x47   :  { %1911 = vmatprep.subr.bf16.mxu1 %v2142_v1 }
  0x48   :  { %1627 = vmatmul.mubr.bf16.vlgmr.msra.gmra.mrb[0].mxu0 %v107_v20  ;;  %v2402_v20 = vld [vmem:[%s2526_s8] sm:$0xf] }
  0x49   :  { %1631 = vmatpush3.bf16.msra.mxu0 %v2020_v17  ;;  %1646 = vmatprep.mubr.msk.bf16.mxu0 %vm2141_vm0, %v2140_v0 }
  0x4a   :  { %1632 = vmatprep.subr.bf16.mxu0 %v2140_v0  ;;  %1913 = vmatpush3.bf16.msra.mxu1 %v2363_v58 }
  0x4b   :  { %1914 = vmatprep.subr.bf16.mxu1 %v2142_v1 }
  0x4d   :  { %1633 = vmatpush3.bf16.msra.mxu0 %v2021_v22 }
  0x4e   :  { %1634 = vmatprep.subr.bf16.mxu0 %v2140_v0 }
  0x51   :  { %1635 = vmatpush3.bf16.msra.mxu0 %v2022_v26 }
  0x52   :  { %1636 = vmatprep.subr.bf16.mxu0 %v2140_v0 }
  0x55   :  { %1637 = vmatpush3.bf16.msra.mxu0 %v2023_v28 }
  0x56   :  { %1638 = vmatprep.subr.bf16.mxu0 %v2140_v0 }
  0x59   :  { %1639 = vmatpush3.bf16.msra.mxu0 %v2024_v29 }
  0x5a   :  { %1640 = vmatprep.subr.bf16.mxu0 %v2140_v0 }
  0x5d   :  { %1641 = vmatpush3.bf16.msra.mxu0 %v2025_v30 }
  0x5e   :  { %1642 = vmatprep.subr.bf16.mxu0 %v2140_v0 }
  0x61   :  { %1643 = vmatpush3.bf16.msra.mxu0 %v2026_v31 }
  0x62   :  { %1644 = vmatprep.subr.bf16.mxu0 %v2140_v0 }
  0x65   :  { %1645 = vmatpush3.bf16.msra.mxu0 %v2027_v32 }
  0x66   :  { %1650 = vmatprep.subr.bf16.mxu0 %v2140_v0 }
  0x68   :  { %1647 = vmatmul.mubr.bf16.vlgmr.msra.gmra.mrb[0].mxu0 %v88_v35 }
  0x69   :  { %1651 = vmatpush3.bf16.msra.mxu0 %v2028_v36  ;;  %1666 = vmatprep.mubr.msk.bf16.mxu0 %vm2141_vm0, %v2140_v0  ;;  %v577_v36 = vld [vmem:[%s2522_s4] sm:$0x1] }
  0x6a   :  { %1652 = vmatprep.subr.bf16.mxu0 %v2140_v0 }
  0x6d   :  { %1653 = vmatpush3.bf16.msra.mxu0 %v2029_v37 }
  0x6e   :  { %1654 = vmatprep.subr.bf16.mxu0 %v2140_v0 }
  0x71   :  { %1655 = vmatpush3.bf16.msra.mxu0 %v2030_v38  ;;  %v2036_v38 = vld [vmem:[#allocation6 + $0x40] sm:$0xff]  }
  0x72   :  { %1656 = vmatprep.subr.bf16.mxu0 %v2140_v0 }
  0x75   :  { %1657 = vmatpush3.bf16.msra.mxu0 %v2031_v39 }
  0x76   :  { %1658 = vmatprep.subr.bf16.mxu0 %v2140_v0 }
  0x79   :  { %1659 = vmatpush3.bf16.msra.mxu0 %v2032_v40  ;;  %v2037_v40 = vld [vmem:[#allocation6 + $0x48] sm:$0xff]  }
  0x7a   :  { %1660 = vmatprep.subr.bf16.mxu0 %v2140_v0 }
  0x7d   :  { %1661 = vmatpush3.bf16.msra.mxu0 %v2033_v41  ;;  %v2038_v41 = vld [vmem:[#allocation6 + $0x50] sm:$0xff]  }
  0x7e   :  { %1662 = vmatprep.subr.bf16.mxu0 %v2140_v0 }
  0x81   :  { %1663 = vmatpush3.bf16.msra.mxu0 %v2034_v42  ;;  %v2039_v42 = vld [vmem:[#allocation6 + $0x58] sm:$0xff]  }
  0x82   :  { %1664 = vmatprep.subr.bf16.mxu0 %v2140_v0 }
  0x85   :  { %1665 = vmatpush3.bf16.msra.mxu0 %v2035_v43  ;;  %v2040_v43 = vld [vmem:[#allocation6 + $0x60] sm:$0xff]  }
  0x86   :  { %1938 = vmatprep.subr.bf16.mxu0 %v2142_v1 }
  0x88   :  { %1667 = vmatmul.mubr.bf16.vlgmr.msra.gmra.mrb[0].mxu0 %v304_v46  ;;  %v2043_v46 = vld [vmem:[#allocation6 + $0x78] sm:$0xff]  }
  0x89   :  { %1940 = vmatpush3.bf16.msra.mxu0 %v2257_v15  ;;  %1842 = vmatprep.mubr.msk.f32.mxu0 %vm2141_vm0, %v2140_v0 }
  0x8a   :  { %1941 = vmatprep.subr.bf16.mxu0 %v2142_v1 }
  0x8d   :  { %1943 = vmatpush3.bf16.msra.mxu0 %v2271_v21 }
  0x8e   :  { %1944 = vmatprep.subr.bf16.mxu0 %v2142_v1 }
  0x91   :  { %1946 = vmatpush3.bf16.msra.mxu0 %v2282_v25 }
  0x92   :  { %1947 = vmatprep.subr.bf16.mxu0 %v2142_v1 }
  0x95   :  { %1949 = vmatpush3.bf16.msra.mxu0 %v2289_v27 }
  0x96   :  { %1950 = vmatprep.subr.bf16.mxu0 %v2142_v1 }
  0x99   :  { %1952 = vmatpush3.bf16.msra.mxu0 %v2327_v49 }
  0x9a   :  { %1953 = vmatprep.subr.bf16.mxu0 %v2142_v1 }
  0x9d   :  { %1955 = vmatpush3.bf16.msra.mxu0 %v2339_v52 }
  0x9e   :  { %1956 = vmatprep.subr.bf16.mxu0 %v2142_v1 }
  0xa1   :  { %1958 = vmatpush3.bf16.msra.mxu0 %v2351_v55 }
  0xa2   :  { %1959 = vmatprep.subr.bf16.mxu0 %v2142_v1 }
  0xa5   :  { %1961 = vmatpush3.bf16.msra.mxu0 %v2363_v58 }
  0xa6   :  { %1962 = vmatprep.subr.bf16.mxu0 %v2142_v1 }
 0x15b   :  { %v2369_v59 = vpop.f32.mrb[0].mxu0 }
 0x15c   :  { %v1668_v60 = vpop.f32.mrb[1].mxu0  ;;  %v419_v62 = vmul.f32 %v2369_v59, %v2369_v59 }
 0x15d   :  { %v2371_v61 = vpop.f32.mrb[2].mxu0 }
 0x15e   :  { %v412_v63 = vadd.f32 %v2371_v61, %v2369_v59  ;;  %v420_v2 = vmul.f32 %v2371_v61, %v2371_v61  ;;  %v1669_v3 = vpop.f32.mrb[3].mxu0 }
 0x160   :  { %v413_v4 = vrot.slane %v412_v63, 4  ;;  %v421_v7 = vadd.f32 %v420_v2, %v419_v62 }
 0x162   :  { %v414_v8 = vadd.f32 %v413_v4, %v412_v63  ;;  %v422_v13 = vrot.slane %v421_v7, 4 }
 0x164   :  { %v415_v9 = vrot.slane %v414_v8, 2  ;;  %v423_v14 = vadd.f32 %v422_v13, %v421_v7  ;;  %v2050_v13 = vld [vmem:[#allocation6 + $0x30] sm:$0xff]  }
 0x166   :  { %v416_v10 = vadd.f32 %v415_v9, %v414_v8  ;;  %v424_v16 = vrot.slane %v423_v14, 2  ;;  %v2044_v8 = vld [vmem:[#allocation6] sm:$0xff]  }
 0x168   :  { %v417_v11 = vrot.slane %v416_v10, 1  ;;  %v425_v17 = vadd.f32 %v424_v16, %v423_v14  ;;  %v2051_v14 = vld [vmem:[#allocation6 + $0x38] sm:$0xff]  }
 0x16a   :  { %v418_v12 = vadd.f32 %v417_v11, %v416_v10  ;;  %v426_v18 = vrot.slane %v425_v17, 1  ;;  %v2045_v10 = vld [vmem:[#allocation6 + $0x8] sm:$0xff]   ;;  %v2048_v11 = vld [vmem:[#allocation6 + $0x20] sm:$0xff]  }
 0x16c   :  { %1703 = vmatmul.mubr.f32.vlgmr.msra.gmra.mrb[0].mxu1 %v418_v12  ;;  %v427_v19 = vadd.f32 %v426_v18, %v425_v17  ;;  %v2049_v12 = vld [vmem:[#allocation6 + $0x28] sm:$0xff]   ;;  %v2052_v18 = vld [vmem:[#allocation6 + $0x80] sm:$0xff]  }
 0x16d   :  { %1916 = vmatpush3.bf16.msra.mxu1 %v2257_v15  ;;  %1737 = vmatprep.mubr.msk.f32.mxu1 %vm2141_vm0, %v2140_v0 }
 0x16e   :  { %1917 = vmatprep.subr.bf16.mxu1 %v2142_v1 }
 0x171   :  { %1919 = vmatpush3.bf16.msra.mxu1 %v2271_v21 }
 0x172   :  { %1920 = vmatprep.subr.bf16.mxu1 %v2142_v1 }
 0x175   :  { %1922 = vmatpush3.bf16.msra.mxu1 %v2282_v25 }
 0x176   :  { %1923 = vmatprep.subr.bf16.mxu1 %v2142_v1 }
 0x179   :  { %1925 = vmatpush3.bf16.msra.mxu1 %v2289_v27 }
 0x17a   :  { %1926 = vmatprep.subr.bf16.mxu1 %v2142_v1 }
 0x17d   :  { %1928 = vmatpush3.bf16.msra.mxu1 %v2327_v49 }
 0x17e   :  { %1929 = vmatprep.subr.bf16.mxu1 %v2142_v1 }
 0x181   :  { %1931 = vmatpush3.bf16.msra.mxu1 %v2339_v52 }
 0x182   :  { %1932 = vmatprep.subr.bf16.mxu1 %v2142_v1 }
 0x185   :  { %1934 = vmatpush3.bf16.msra.mxu1 %v2351_v55 }
 0x186   :  { %1935 = vmatprep.subr.bf16.mxu1 %v2142_v1 }
 0x189   :  { %1937 = vmatpush3.bf16.msra.mxu1 %v2363_v58 }
 0x18a   :  { %1740 = vmatprep.subr.mxu1 %v2140_v0 }
 0x18c   :  { %1738 = vmatmul.mubr.f32.vlgmr.msra.gmra.mrb[2].mxu1 %v427_v19 }
 0x18d   :  { %1742 = vmatprep.mubr.msk.f32.mxu1 %vm2141_vm0, %v2140_v0  ;;  %1741 = vmatpush3.msk.msra.mxu1 %vm584_vm1, %v2402_v20 }
 0x18e   :  { %1745 = vmatprep.subr.mxu1 %v2140_v0 }
 0x23f   :  { %v494_v22 = vpop.f32.mrb[0].mxu1 }
 0x240   :  { %v1704_v23 = vpop.f32.mrb[1].mxu1  ;;  %v499_v24 = vmul.f32 0.001953125, %v494_v22  ;;  %v2053_v22 = vld [vmem:[#allocation6 + $0x88] sm:$0xff]  }
 0x241   :  { %v2054_v23 = vld [vmem:[#allocation6 + $0x90] sm:$0xff]  }
 0x242   :  { %v571_v28 = vmul.f32 %v499_v24, %v499_v24 }
 0x25f   :  { %v566_v26 = vpop.f32.mrb[2].mxu1 }
 0x260   :  { %v570_v29 = vmul.f32 0.001953125, %v566_v26  ;;  %v1739_v30 = vpop.f32.mrb[3].mxu1  ;;  %v2056_v26 = vld [vmem:[#allocation6 + $0xa0] sm:$0xff]  }
 0x261   :  { %v2059_v30 = vld [vmem:[#allocation6 + $0xb8] sm:$0xff]  }
 0x262   :  { %v572_v31 = vsub.f32 %v570_v29, %v571_v28  ;;  %v2057_v28 = vld [vmem:[#allocation6 + $0xa8] sm:$0xff]   ;;  %v2058_v29 = vld [vmem:[#allocation6 + $0xb0] sm:$0xff]  }
 0x264   :  { %v574_v32 = vadd.f32 1e-05, %v572_v31 }
 0x266   :  { %2060 = vrsqrt.f32 %v574_v32 }
 0x270   :  { %v2061_v34 = vpop.eup %2060 }
 0x271   :  { %v576_v35 = vmul.f32 %v2061_v34, %v573_v33 }
 0x273   :  { %1743 = vmatmul.mubr.msk.f32.vlgmr.msra.gmra.mrb[4].mxu1 %vm580_vm2, %v576_v35  ;;  %v578_v37 = vmul.f32 %v576_v35, %v499_v24  ;;  %v2055_v24 = vld [vmem:[#allocation6 + $0x98] sm:$0xff]  }
 0x274   :  { %1746 = vmatpush3.msk.msra.mxu1 %vm584_vm1, %v2402_v20  ;;  %1747 = vmatprep.mubr.msk.f32.mxu1 %vm2141_vm0, %v2140_v0 }
 0x275   :  { %v579_v39 = vsub.f32 %v577_v36, %v578_v37  ;;  %1750 = vmatprep.subr.bf16.mxu1 %v2140_v0 }
 0x277   :  { %1748 = vmatmul.mubr.msk.f32.vlgmr.msra.gmra.mrb[6].mxu1 %vm580_vm2, %v579_v39 }
 0x278   :  { %1751 = vmatpush3.bf16.msra.mxu1 %v2036_v38  ;;  %1766 = vmatprep.mubr.msk.bf16.mxu1 %vm2141_vm0, %v2140_v0 }
 0x279   :  { %1752 = vmatprep.subr.bf16.mxu1 %v2140_v0 }
 0x27c   :  { %1753 = vmatpush3.bf16.msra.mxu1 %v2037_v40 }
 0x27d   :  { %1754 = vmatprep.subr.bf16.mxu1 %v2140_v0 }
 0x280   :  { %1755 = vmatpush3.bf16.msra.mxu1 %v2038_v41 }
 0x281   :  { %1756 = vmatprep.subr.bf16.mxu1 %v2140_v0 }
 0x284   :  { %1757 = vmatpush3.bf16.msra.mxu1 %v2039_v42 }
 0x285   :  { %1758 = vmatprep.subr.bf16.mxu1 %v2140_v0 }
 0x288   :  { %1759 = vmatpush3.bf16.msra.mxu1 %v2040_v43 }
 0x289   :  { %1760 = vmatprep.subr.bf16.mxu1 %v2140_v0 }
 0x28c   :  { %1761 = vmatpush3.bf16.msra.mxu1 %v2041_v44 }
 0x28d   :  { %1762 = vmatprep.subr.bf16.mxu1 %v2140_v0 }
 0x290   :  { %1763 = vmatpush3.bf16.msra.mxu1 %v2042_v45 }
 0x291   :  { %1764 = vmatprep.subr.bf16.mxu1 %v2140_v0 }
 0x294   :  { %1765 = vmatpush3.bf16.msra.mxu1 %v2043_v46 }
 0x295   :  { %1770 = vmatprep.subr.bf16.mxu1 %v2140_v0 }
 0x346   :  { %v654_v51 = vpop.f32.mrb[4].mxu1 }
 0x347   :  { %v661_v53 = vrot.slane %v654_v51, %v2430_v50  ;;  %v1744_v54 = vpop.f32.mrb[5].mxu1 }
 0x349   :  { %v662_v56 = vmul.f32 %v661_v53, %v2369_v59  ;;  %v663_v57 = vmul.f32 %v661_v53, %v2371_v61  ;;  %v2046_v59 = vld [vmem:[#allocation6 + $0x10] sm:$0xff]   ;;  %v2047_v61 = vld [vmem:[#allocation6 + $0x18] sm:$0xff]  }
 0x34a   :  { %v733_v60 = vpop.f32.mrb[6].mxu1 }
 0x34b   :  { %v740_v62 = vrot.slane %v733_v60, %v2430_v50  ;;  %v1749_v63 = vpop.f32.mrb[7].mxu1  ;;  %v1233_v60 = vld [vmem:[%s2523_s5] sm:$0x1]  ;;  %s2143_s5 = smov [#allocation8]  }
 0x34d   :  { %v741_v2 = vadd.f32 %v740_v62, %v662_v56  ;;  %v742_v3 = vadd.f32 %v740_v62, %v663_v57 }
 0x34f   :  { %v743_v4 = vmax.f32 %v741_v2, 0.0  ;;  %v744_v7 = vmax.f32 %v742_v3, 0.0  ;;  %v1237_v2 = vld [vmem:[%s2524_s6] sm:$0x1]  ;;  %s1411_s6 = sshll.u32 %s2143_s5, 4  ;;  %s1412_s6 = int_to_ptr.vmem [resolvable:$true] %s1411_s6 }
 0x350   :  { %s2108_s29 = scalar_lea.vmem %s1412_s6, 256  ;;  %p2113_p3 = scmp.lt.s32.totalorder %s1412_s6, %s1412_s6 }
 0x351   :  { %745 = vst [vmem:[#allocation2 + $0x1] sm:$0xff] %v743_v4  ;;  %746 = vst [vmem:[#allocation2 + $0x9] sm:$0xff] %v744_v7  ;;  %v768_v9 = vpack.c.bf16 %v744_v7, %v743_v4  ;;  %p2109_p2 = scmp.ne.s32.totalorder %s1412_s6, %s2108_s29  ;;  %p2114_p4 = scmp.lt.s32.totalorder %s2108_s29, %s2108_s29 }
 0x353   :  { %1767 = vmatmul.mubr.bf16.vlgmr.msra.gmra.mrb[8].mxu1 %v768_v9  ;;  %p2115_p5 = por %p2114_p4, %p2113_p3 }
 0x354   :  { %1771 = vmatpush3.bf16.msra.mxu1 %v2044_v8  ;;  %1786 = vmatprep.mubr.msk.bf16.mxu1 %vm2141_vm0, %v2140_v0 }
 0x355   :  { %1772 = vmatprep.subr.bf16.mxu1 %v2140_v0  ;;  %p2116_p6 = pnand %p2115_p5, %p2109_p2 }
 0x358   :  { %1773 = vmatpush3.bf16.msra.mxu1 %v2045_v10  ;;  %v747_v16 = vld [vmem:[#allocation2] sm:$0xff]  ;;  %v748_v17 = vld [vmem:[#allocation2 + $0x8] sm:$0xff] }
 0x359   :  { %1774 = vmatprep.subr.bf16.mxu1 %v2140_v0  ;;  %v749_v19 = vpack.c.bf16 %v748_v17, %v747_v16  ;;  %v963_v31 = vld [vmem:[#allocation2 + $0x2] sm:$0xff]  ;;  %v964_v32 = vld [vmem:[#allocation2 + $0xa] sm:$0xff] }
 0x35a   :  { %v965_v33 = vpack.c.bf16 %v964_v32, %v963_v31 }
 0x35c   :  { %1775 = vmatpush3.bf16.msra.mxu1 %v2046_v59 }
 0x35d   :  { %1776 = vmatprep.subr.bf16.mxu1 %v2140_v0 }
 0x360   :  { %1777 = vmatpush3.bf16.msra.mxu1 %v2047_v61 }
 0x361   :  { %1778 = vmatprep.subr.bf16.mxu1 %v2140_v0 }
 0x364   :  { %1779 = vmatpush3.bf16.msra.mxu1 %v2048_v11 }
 0x365   :  { %1780 = vmatprep.subr.bf16.mxu1 %v2140_v0 }
 0x368   :  { %1781 = vmatpush3.bf16.msra.mxu1 %v2049_v12 }
 0x369   :  { %1782 = vmatprep.subr.bf16.mxu1 %v2140_v0 }
 0x36c   :  { %1783 = vmatpush3.bf16.msra.mxu1 %v2050_v13 }
 0x36d   :  { %1784 = vmatprep.subr.bf16.mxu1 %v2140_v0 }
 0x370   :  { %1785 = vmatpush3.bf16.msra.mxu1 %v2051_v14 }
 0x371   :  { %1790 = vmatprep.subr.bf16.mxu1 %v2140_v0 }
 0x373   :  { %1787 = vmatmul.mubr.bf16.vlgmr.msra.gmra.mrb[8].mxu1 %v749_v19 }
 0x374   :  { %1791 = vmatpush3.bf16.msra.mxu1 %v2052_v18  ;;  %1806 = vmatprep.mubr.msk.bf16.mxu1 %vm2141_vm0, %v2140_v0 }
 0x375   :  { %1792 = vmatprep.subr.bf16.mxu1 %v2140_v0 }
 0x378   :  { %1793 = vmatpush3.bf16.msra.mxu1 %v2053_v22 }
 0x379   :  { %1794 = vmatprep.subr.bf16.mxu1 %v2140_v0 }
 0x37c   :  { %1795 = vmatpush3.bf16.msra.mxu1 %v2054_v23 }
 0x37d   :  { %1796 = vmatprep.subr.bf16.mxu1 %v2140_v0 }
 0x380   :  { %1797 = vmatpush3.bf16.msra.mxu1 %v2055_v24 }
 0x381   :  { %1798 = vmatprep.subr.bf16.mxu1 %v2140_v0 }
 0x384   :  { %1799 = vmatpush3.bf16.msra.mxu1 %v2056_v26 }
 0x385   :  { %1800 = vmatprep.subr.bf16.mxu1 %v2140_v0 }
 0x388   :  { %1801 = vmatpush3.bf16.msra.mxu1 %v2057_v28 }
 0x389   :  { %1802 = vmatprep.subr.bf16.mxu1 %v2140_v0 }
 0x38c   :  { %1803 = vmatpush3.bf16.msra.mxu1 %v2058_v29 }
 0x38d   :  { %1804 = vmatprep.subr.bf16.mxu1 %v2140_v0 }
 0x390   :  { %1805 = vmatpush3.bf16.msra.mxu1 %v2059_v30 }
 0x393   :  { %1807 = vmatmul.mubr.bf16.vlgmr.msra.gmra.mrb[8].mxu1 %v965_v33 }
 0x466   :  { %v2455_v34 = vpop.f32.mrb[8].mxu1 }
 0x467   :  { %v1808_v35 = vpop.f32.mrb[9].mxu1  ;;  %v1080_v37 = vmul.f32 %v2455_v34, %v2455_v34 }
 0x468   :  { %v2457_v36 = vpop.f32.mrb[10].mxu1 }
 0x469   :  { %v1073_v38 = vadd.f32 %v2457_v36, %v2455_v34  ;;  %v1081_v39 = vmul.f32 %v2457_v36, %v2457_v36  ;;  %v1809_v40 = vpop.f32.mrb[11].mxu1 }
 0x46b   :  { %v1074_v41 = vrot.slane %v1073_v38, 4  ;;  %v1082_v42 = vadd.f32 %v1081_v39, %v1080_v37 }
 0x46d   :  { %v1075_v43 = vadd.f32 %v1074_v41, %v1073_v38  ;;  %v1083_v48 = vrot.slane %v1082_v42, 4 }
 0x46f   :  { %v1076_v44 = vrot.slane %v1075_v43, 2  ;;  %v1084_v51 = vadd.f32 %v1083_v48, %v1082_v42 }
 0x471   :  { %v1077_v45 = vadd.f32 %v1076_v44, %v1075_v43 }
 0x473   :  { %v1078_v46 = vrot.slane %v1077_v45, 1 }
 0x475   :  { %v1079_v47 = vadd.f32 %v1078_v46, %v1077_v45 }
 0x477   :  { %1843 = vmatmul.mubr.f32.vlgmr.msra.gmra.mrb[4].mxu0 %v1079_v47 }
 0x478   :  { %1964 = vmatpush3.bf16.msra.mxu0 %v2257_v15  ;;  %1877 = vmatprep.mubr.msk.f32.mxu0 %vm2141_vm0, %v2140_v0  ;;  %v1085_v15 = vrot.slane %v1084_v51, 2 }
 0x479   :  { %1965 = vmatprep.subr.bf16.mxu0 %v2142_v1 }
 0x47c   :  { %1967 = vmatpush3.bf16.msra.mxu0 %v2271_v21  ;;  %v1086_v21 = vadd.f32 %v1085_v15, %v1084_v51 }
 0x47d   :  { %1968 = vmatprep.subr.bf16.mxu0 %v2142_v1 }
 0x480   :  { %1970 = vmatpush3.bf16.msra.mxu0 %v2282_v25  ;;  %v1087_v25 = vrot.slane %v1086_v21, 1 }
 0x481   :  { %1971 = vmatprep.subr.bf16.mxu0 %v2142_v1 }
 0x484   :  { %1973 = vmatpush3.bf16.msra.mxu0 %v2289_v27  ;;  %v1088_v27 = vadd.f32 %v1087_v25, %v1086_v21 }
 0x485   :  { %1974 = vmatprep.subr.bf16.mxu0 %v2142_v1 }
 0x488   :  { %1976 = vmatpush3.bf16.msra.mxu0 %v2327_v49 }
 0x489   :  { %1977 = vmatprep.subr.bf16.mxu0 %v2142_v1 }
 0x48c   :  { %1979 = vmatpush3.bf16.msra.mxu0 %v2339_v52 }
 0x48d   :  { %1980 = vmatprep.subr.bf16.mxu0 %v2142_v1 }
 0x490   :  { %1982 = vmatpush3.bf16.msra.mxu0 %v2351_v55 }
 0x491   :  { %1983 = vmatprep.subr.bf16.mxu0 %v2142_v1 }
 0x494   :  { %1985 = vmatpush3.bf16.msra.mxu0 %v2363_v58 }
 0x495   :  { %1880 = vmatprep.subr.mxu0 %v2140_v0 }
 0x497   :  { %1878 = vmatmul.mubr.f32.vlgmr.msra.gmra.mrb[6].mxu0 %v1088_v27 }
 0x498   :  { %1881 = vmatpush3.msk.msra.mxu0 %vm584_vm1, %v2402_v20  ;;  %1882 = vmatprep.mubr.msk.f32.mxu0 %vm2141_vm0, %v2140_v0 }
 0x499   :  { %1885 = vmatprep.subr.mxu0 %v2140_v0 }
 0x54a   :  { %v1155_v49 = vpop.f32.mrb[4].mxu0 }
 0x54b   :  { %v1844_v52 = vpop.f32.mrb[5].mxu0  ;;  %v1159_v55 = vmul.f32 0.001953125, %v1155_v49 }
 0x54d   :  { %v1231_v1 = vmul.f32 %v1159_v55, %v1159_v55 }
 0x56a   :  { %v1226_v53 = vpop.f32.mrb[6].mxu0 }
 0x56b   :  { %v1230_v54 = vmul.f32 0.001953125, %v1226_v53  ;;  %v1879_v56 = vpop.f32.mrb[7].mxu0 }
 0x56d   :  { %v1232_v58 = vsub.f32 %v1230_v54, %v1231_v1 }
 0x56f   :  { %v1234_v57 = vadd.f32 1e-05, %v1232_v58 }
 0x571   :  { %2062 = vrsqrt.f32 %v1234_v57 }
 0x57b   :  { %v2063_v62 = vpop.eup %2062 }
 0x57c   :  { %v1236_v63 = vmul.f32 %v2063_v62, %v1233_v60 }
 0x57e   :  { %1883 = vmatmul.mubr.msk.f32.vlgmr.msra.gmra.mrb[8].mxu0 %vm580_vm2, %v1236_v63  ;;  %v1238_v3 = vmul.f32 %v1236_v63, %v1159_v55 }
 0x57f   :  { %1886 = vmatpush3.msk.msra.mxu0 %vm584_vm1, %v2402_v20  ;;  %1887 = vmatprep.mubr.msk.f32.mxu0 %vm2141_vm0, %v2140_v0 }
 0x580   :  { %v1239_v4 = vsub.f32 %v1237_v2, %v1238_v3 }
 0x582   :  { %1888 = vmatmul.mubr.msk.f32.vlgmr.msra.gmra.mrb[10].mxu0 %vm580_vm2, %v1239_v4 }
 0x651   :  { %v1309_v7 = vpop.f32.mrb[8].mxu0 }
 0x652   :  { %v1316_v8 = vrot.slane %v1309_v7, %v2430_v50  ;;  %v1884_v9 = vpop.f32.mrb[9].mxu0 }
 0x654   :  { %v1317_v10 = vmul.f32 %v1316_v8, %v2455_v34  ;;  %v1318_v59 = vmul.f32 %v1316_v8, %v2457_v36 }
 0x655   :  { %v1388_v61 = vpop.f32.mrb[10].mxu0 }
 0x656   :  { %v1395_v11 = vrot.slane %v1388_v61, %v2430_v50  ;;  %v1889_v12 = vpop.f32.mrb[11].mxu0 }
 0x658   :  { %v1396_v13 = vadd.f32 %v1395_v11, %v1317_v10  ;;  %v1397_v20 = vadd.f32 %v1395_v11, %v1318_v59 }
 0x65a   :  { %v1400_v0 = vadd.f32 %v1396_v13, %v2234_v5  ;;  %v1401_v14 = vadd.f32 %v1397_v20, %v2239_v6 }
 0x65c   :  { %v1402_v16 = vmax.f32 %v1400_v0, 0.0  ;;  %v1403_v17 = vmax.f32 %v1401_v14, 0.0 }
 0x65e   :  { %1404 = vst [vmem:[#allocation8] sm:$0xff] %v1402_v16  ;;  %1405 = vst [vmem:[#allocation8 + $0x8] sm:$0xff] %v1403_v17 }
 0x65f   :  { %2119 = shalt.err (!%p2116_p6)
}
 0x660   :  { %s2120_s12 = scalar_lea.hbm %s2527_s9, 256 }
 0x661   :  { %p2121_p7 = scmp.ne.s32.totalorder %s2527_s9, %s2120_s12  ;;  %p2124_p8 = scmp.lt.u32.totalorder %s2120_s12, %s2527_s9 }
 0x663   :  { %p2126_p9 = pnand %p2124_p8, %p2121_p7 }
 0x665   :  { %2129 = shalt.err (!%p2126_p9)
}
 0x666   :  { %s2144_s14 = smov 128   ;;  %s2145_s15 = smov 8  }
 0x667   :  { %1417 = dma.vmem_to_hbm [thread:$0]  %s1412_s6, 256, %s2527_s9, [#allocation5], %s2144_s14, %s2144_s14, %s2145_s15  }
 0x668   :  { %2134 = dma.done.wait [#allocation5], 256  }
 0x669   :  { %2135 = vsyncadd [#allocation5], 4294967040 }
 0x66a   :  { %1421 = vsyncpa [#allocation4], 1 }
 0x66b   :  { %1422 = vsyncpa [#allocation7], 1 }
 0x66c   :  { %1423 = vsyncpa [#allocation5], 1 }

</bundles_post_ra>
